<compile_context>
chip_gen: v6e
topology: v6e:2x2x1
jax: 0.10.0
libtpu: 0.0.40
codegen_flags: <defaults>
</compile_context>

<pallas_src>
import functools

import jax
import jax.numpy as jnp
from jax.experimental import pallas as pl
from jax.experimental.pallas import tpu as pltpu


def _round_up(x, m):
    return (x + m - 1) // m * m


_VMEM_LIMIT_CACHE = [None]


def _vmem_limit_bytes():
    """Generation-aware scoped-VMEM cap.

    v5e / v6e have 128 MiB physical VMEM -> allow ~100 MiB.
    v7x has 64 MiB physical -> keep the conservative 48 MiB used previously.
    """
    if _VMEM_LIMIT_CACHE[0] is None:
        try:
            kind = jax.devices()[0].device_kind.lower()
        except Exception:
            kind = ""
        if ("v5" in kind) or ("v6" in kind):
            _VMEM_LIMIT_CACHE[0] = 100 * 1024 * 1024
        else:
            _VMEM_LIMIT_CACHE[0] = 48 * 1024 * 1024
    return _VMEM_LIMIT_CACHE[0]


# ---------------------------------------------------------------------------
# Pallas kernels
# ---------------------------------------------------------------------------
def _mm1_kernel(a_ref, b_ref, o_ref, *, relu):
    """Single-K-step matmul (Kp == tk): no accumulator scratch, no pl.when."""
    y = jnp.dot(a_ref[...], b_ref[...], preferred_element_type=jnp.float32)
    if relu:
        y = jnp.maximum(y, 0.0)
    o_ref[...] = y.astype(o_ref.dtype)


def _mm1_stats_kernel(a_ref, b_ref, o_ref, s_ref, *, relu):
    """Single-K matmul + fused per-tile BatchNorm partial sums (row stores)."""
    y = jnp.dot(a_ref[...], b_ref[...], preferred_element_type=jnp.float32)
    if relu:
        y = jnp.maximum(y, 0.0)
    o_ref[...] = y.astype(o_ref.dtype)
    s_ref[0:1, :] = jnp.sum(y, axis=0, keepdims=True)
    s_ref[1:2, :] = jnp.sum(y * y, axis=0, keepdims=True)


def _mm_kernel(a_ref, b_ref, o_ref, acc_ref, *, relu):
    """K-tiled matmul. grid = (G, M/tm, N/tn, K/tk), K innermost."""
    k = pl.program_id(3)

    @pl.when(k == 0)
    def _():
        acc_ref[...] = jnp.zeros_like(acc_ref)

    acc_ref[...] += jnp.dot(a_ref[...], b_ref[...],
                            preferred_element_type=jnp.float32)

    @pl.when(k == pl.num_programs(3) - 1)
    def _():
        y = acc_ref[...]
        if relu:
            y = jnp.maximum(y, 0.0)
        o_ref[...] = y.astype(o_ref.dtype)


def _mm_stats_kernel(a_ref, b_ref, o_ref, s_ref, acc_ref, *, relu):
    """K-tiled matmul + fused BatchNorm partial sums at the final K step."""
    k = pl.program_id(3)

    @pl.when(k == 0)
    def _():
        acc_ref[...] = jnp.zeros_like(acc_ref)

    acc_ref[...] += jnp.dot(a_ref[...], b_ref[...],
                            preferred_element_type=jnp.float32)

    @pl.when(k == pl.num_programs(3) - 1)
    def _():
        y = acc_ref[...]
        if relu:
            y = jnp.maximum(y, 0.0)
        o_ref[...] = y.astype(o_ref.dtype)
        s_ref[0:1, :] = jnp.sum(y, axis=0, keepdims=True)
        s_ref[1:2, :] = jnp.sum(y * y, axis=0, keepdims=True)


def _bn_apply_kernel(y_ref, scale_ref, shift_ref, o_ref):
    """out = y * scale + shift (scale/shift precomputed); lane-dense stores only."""
    o_ref[...] = (y_ref[...] * scale_ref[...] + shift_ref[...]).astype(o_ref.dtype)


# ---------------------------------------------------------------------------
# Pallas wrappers
# ---------------------------------------------------------------------------
def tiled_matmul(a, b, *, out_dtype=jnp.float32, with_stats=False, relu=False):
    """Batched tiled matmul on the MXU (bf16 inputs, f32 accumulation).

    a: [G, M, K], b: [G, K, N].  Returns the *padded* product y [G, Mp, Np] in
    out_dtype (callers keep the padding; slices fuse into later relayouts) and,
    if with_stats, per-channel (sum, sum_sq) of y reduced over G and M, shape
    (2, Np) float32.

    NOTE: zero-padding of A rows / B columns keeps the padded region of y
    exactly zero; the fused BatchNorm statistics rely on that (padded rows and
    channels contribute nothing to sum / sum_sq).
    """
    G, M, K = a.shape
    _, _, N = b.shape
    # Review: larger tiles (~9-10 MiB double-buffered) cut HBM re-reads and
    # amortize per-grid-step overhead on every generation.
    tm = min(1024, _round_up(M, 16))
    tk = min(512, _round_up(K, 128))
    tn = min(512, _round_up(N, 128))
    Mp, Kp, Np = _round_up(M, tm), _round_up(K, tk), _round_up(N, tn)

    a = jnp.pad(a, ((0, 0), (0, Mp - M), (0, Kp - K))).astype(jnp.bfloat16)
    b = jnp.pad(b, ((0, 0), (0, Kp - K), (0, Np - N))).astype(jnp.bfloat16)

    y_shape = jax.ShapeDtypeStruct((G, Mp, Np), out_dtype)
    single_k = (Kp == tk)

    if single_k:
        # Whole K fits one tile: drop the K axis, accumulator and pl.when gates.
        grid = (G, Mp // tm, Np // tn)
        in_specs = [pl.BlockSpec((None, tm, Kp), lambda g, i, j: (g, i, 0)),
                    pl.BlockSpec((None, Kp, tn), lambda g, i, j: (g, 0, j))]
        y_spec = pl.BlockSpec((None, tm, tn), lambda g, i, j: (g, i, j))
        s_spec = pl.BlockSpec((None, None, 2, tn), lambda g, i, j: (g, i, 0, j))
        scratch = []
        sem = ("parallel", "parallel", "parallel")
        kernel = (functools.partial(_mm1_stats_kernel, relu=relu) if with_stats
                  else functools.partial(_mm1_kernel, relu=relu))
    else:
        grid = (G, Mp // tm, Np // tn, Kp // tk)
        in_specs = [pl.BlockSpec((None, tm, tk), lambda g, i, j, k: (g, i, k)),
                    pl.BlockSpec((None, tk, tn), lambda g, i, j, k: (g, k, j))]
        y_spec = pl.BlockSpec((None, tm, tn), lambda g, i, j, k: (g, i, j))
        s_spec = pl.BlockSpec((None, None, 2, tn),
                              lambda g, i, j, k: (g, i, 0, j))
        scratch = [pltpu.VMEM((tm, tn), jnp.float32)]
        sem = ("parallel", "parallel", "parallel", "arbitrary")
        kernel = (functools.partial(_mm_stats_kernel, relu=relu) if with_stats
                  else functools.partial(_mm_kernel, relu=relu))

    if with_stats:
        out_shape = (y_shape,
                     jax.ShapeDtypeStruct((G, Mp // tm, 2, Np), jnp.float32))
        out_specs = (y_spec, s_spec)
    else:
        out_shape = y_shape
        out_specs = y_spec

    res = pl.pallas_call(
        kernel,
        out_shape=out_shape,
        grid_spec=pltpu.PrefetchScalarGridSpec(
            num_scalar_prefetch=0,
            grid=grid,
            in_specs=in_specs,
            out_specs=out_specs,
            scratch_shapes=scratch),
        compiler_params=pltpu.CompilerParams(
            dimension_semantics=sem,
            vmem_limit_bytes=_vmem_limit_bytes()),
    )(a, b)

    if with_stats:
        y, part = res
        stats = jnp.sum(part, axis=(0, 1))   # tiny reduce; stays channel-padded
        return y, stats
    return res


def bn_apply(y_par, scale, shift):
    """Fused BatchNorm affine apply in the padded parity layout.

    y_par: [G, Mp, Np] f32 (M / channel padded), scale, shift: [1, Np].
    Blocks are lane-dense multiples of 128 -> unmasked vector stores; no
    in-kernel concat (the skip concat happens once at the NCHW boundary).
    """
    G, Mp, Np = y_par.shape
    tm = Mp if Mp <= 1024 else 1024
    assert Mp % tm == 0, (Mp, tm)
    return pl.pallas_call(
        _bn_apply_kernel,
        out_shape=jax.ShapeDtypeStruct((G, Mp, Np), jnp.float32),
        grid_spec=pltpu.PrefetchScalarGridSpec(
            num_scalar_prefetch=0,
            grid=(G, Mp // tm),
            in_specs=[pl.BlockSpec((None, tm, Np), lambda g, i: (g, i, 0)),
                      pl.BlockSpec((1, Np), lambda g, i: (0, 0)),
                      pl.BlockSpec((1, Np), lambda g, i: (0, 0))],
            out_specs=pl.BlockSpec((None, tm, Np), lambda g, i: (g, i, 0))),
        compiler_params=pltpu.CompilerParams(
            dimension_semantics=("parallel", "parallel"),
            vmem_limit_bytes=_vmem_limit_bytes()),
    )(y_par, scale, shift)


# ---------------------------------------------------------------------------
# JAX glue: im2col, sub-pixel decomposition, forward pass
# ---------------------------------------------------------------------------
def _im2col(x, ksize, stride, pad):
    """x: [N, H, W, C] -> patches [N*Ho*Wo, k*k*C], minor order (ky, kx, c)."""
    if pad:
        x = jnp.pad(x, ((0, 0), (pad, pad), (pad, pad), (0, 0)))
    n, hp, wp, c = x.shape
    ho = (hp - ksize) // stride + 1
    wo = (wp - ksize) // stride + 1
    cols = []
    for ky in range(ksize):
        for kx in range(ksize):
            cols.append(x[:, ky:ky + stride * (ho - 1) + 1:stride,
                          kx:kx + stride * (wo - 1) + 1:stride, :])
    patches = jnp.stack(cols, axis=3)  # [N, Ho, Wo, k*k, C]
    return patches.reshape(n * ho * wo, ksize * ksize * c), (n, ho, wo)


def unet_innermost_forward(x_nchw, params, eps=1e-5):
    """Forward of UnetSkipConnectionBlock(outer_nc, inner_nc, innermost=True)."""
    x_nchw = x_nchw.astype(jnp.float32)
    N, cin, H, W = x_nchw.shape
    w_down = params["w_down"]            # [inner_nc, cin, 4, 4]      Conv2d OIHW
    w_up = params["w_up"]                # [inner_nc, outer_nc, 4, 4] ConvTranspose2d
    gamma = params["bn_gamma"].astype(jnp.float32)
    beta = params["bn_beta"].astype(jnp.float32)
    inner_nc = w_down.shape[0]
    outer_nc = w_up.shape[1]
    Ho, Wo = H // 2, W // 2
    M = N * Ho * Wo

    x_nhwc = jnp.transpose(x_nchw, (0, 2, 3, 1))

    # ---- down: LeakyReLU(0.2) once on x, Conv2d(k4,s2,p1) as a matmul with the
    #            ReLU of the up path fused into the matmul finalize -------------
    x_act = jnp.where(x_nhwc > 0, x_nhwc, 0.2 * x_nhwc).astype(jnp.bfloat16)
    p_down, _ = _im2col(x_act, ksize=4, stride=2, pad=1)          # [M, 16*cin]
    wd_mat = jnp.transpose(w_down, (2, 3, 1, 0)).reshape(16 * cin, inner_nc)
    h_pad = tiled_matmul(p_down[None], wd_mat[None],
                         out_dtype=jnp.bfloat16, relu=True)       # [1, Mp, Npd]
    # NOTE: h kept in bf16 between the two matmuls (MXU input dtype anyway);
    # acceptable at the test tolerance, tighten to f32 if accuracy matters.
    h = h_pad[0, :M, :inner_nc].reshape(N, Ho, Wo, inner_nc)

    # ---- up: ConvTranspose2d(k4,s2,p1) as 4 sub-pixel 2x2 convs ---------------
    # For output parity (pi,pj): y[2r+pi, 2s+pj] = sum_{ky,kx} h[r+pi-1+ky, s+pj-1+kx]
    #                                               * W[:, :, 3-pi-2ky, 3-pj-2kx]
    hp = jnp.pad(h, ((0, 0), (1, 1), (1, 1), (0, 0)))
    wf = w_up[:, :, ::-1, ::-1]                                   # spatial flip
    a_list, b_list = [], []
    for pi in (0, 1):
        for pj in (0, 1):
            win = hp[:, pi:pi + Ho + 1, pj:pj + Wo + 1, :]
            cols = [win[:, ky:ky + Ho, kx:kx + Wo, :]
                    for ky in range(2) for kx in range(2)]
            a_list.append(jnp.stack(cols, axis=3).reshape(M, 4 * inner_nc))
            b_list.append(jnp.transpose(wf[:, :, pi::2, pj::2],
                                        (2, 3, 0, 1)).reshape(4 * inner_nc, outer_nc))
    a_up = jnp.stack(a_list, axis=0)                              # [4, M, 4*inner_nc]
    b_up = jnp.stack(b_list, axis=0)                              # [4, 4*inner_nc, outer_nc]
    y_par, stats = tiled_matmul(a_up, b_up, out_dtype=jnp.float32,
                                with_stats=True)                  # [4, Mp, Np], (2, Np)
    Np = y_par.shape[-1]

    # ---- BatchNorm2d (training-mode batch stats) -> precomputed scale/shift ---
    # NOTE: var = E[y^2] - E[y]^2 with f32 partial sums; fine here, but a
    # shifted / Welford reduction is safer if per-channel |mean| >> std.
    count = 4.0 * M                       # true element count per channel = N*H*W
    mean = stats[0] / count
    var = stats[1] / count - mean * mean  # biased variance (PyTorch BN)
    inv = jax.lax.rsqrt(var + eps)
    gamma_p = jnp.pad(gamma, (0, Np - outer_nc))   # padded channels -> scale/shift 0
    beta_p = jnp.pad(beta, (0, Np - outer_nc))
    scale = (gamma_p * inv).reshape(1, Np)
    shift = (beta_p - mean * gamma_p * inv).reshape(1, Np)

    # ---- BN apply on the padded parity layout (lane-dense stores) -------------
    y_norm = bn_apply(y_par, scale, shift)                        # [4, Mp, Np]

    # ---- boundary relayout: select real channels, parity -> NCHW, skip concat -
    # x bypasses all kernels; the slice below fuses into the transpose/concat.
    y_nchw = jnp.transpose(
        y_norm[:, :M, :outer_nc].reshape(2, 2, N, Ho, Wo, outer_nc),
        (2, 5, 3, 0, 4, 1)).reshape(N, outer_nc, H, W)
    return jnp.concatenate([x_nchw, y_nchw], axis=1)


# ---------------------------------------------------------------------------
# Pure-JAX f32 reference (for correctness check only)
# ---------------------------------------------------------------------------
def _reference(x, params):
    x = x.astype(jnp.float32)
    w_down, w_up = params["w_down"], params["w_up"]
    g, b = params["bn_gamma"], params["bn_beta"]
    xr = jnp.where(x > 0, x, 0.2 * x)
    h = jax.lax.conv_general_dilated(
        xr, w_down, window_strides=(2, 2), padding=((1, 1), (1, 1)),
        dimension_numbers=("NCHW", "OIHW", "NCHW"))
    hr = jnp.maximum(h, 0.0)
    w_t = jnp.transpose(w_up[:, :, ::-1, ::-1], (1, 0, 2, 3))
    y = jax.lax.conv_general_dilated(
        hr, w_t, window_strides=(1, 1), padding=((2, 2), (2, 2)),
        lhs_dilation=(2, 2), dimension_numbers=("NCHW", "OIHW", "NCHW"))
    mean = jnp.mean(y, axis=(0, 2, 3), keepdims=True)
    var = jnp.mean((y - mean) ** 2, axis=(0, 2, 3), keepdims=True)
    yn = (y - mean) / jnp.sqrt(var + 1e-5) * g.reshape(1, -1, 1, 1) + b.reshape(1, -1, 1, 1)
    return jnp.concatenate([x, yn], axis=1)


# ---------------------------------------------------------------------------
if __name__ == "__main__":
    # Small, module-consistent shapes: outer_nc=4, inner_nc=8, x: [2, 4, 16, 16]
    outer_nc, inner_nc = 4, 8
    N, H, W = 2, 16, 16
    input_nc = outer_nc  # input_nc defaults to outer_nc

    key = jax.random.PRNGKey(0)
    k_x, k_wd, k_wu, k_g, k_b = jax.random.split(key, 5)

    x = jax.random.normal(k_x, (N, input_nc, H, W), dtype=jnp.float32)
    params = {
        "w_down": 0.1 * jax.random.normal(k_wd, (inner_nc, input_nc, 4, 4), jnp.float32),
        "w_up": 0.1 * jax.random.normal(k_wu, (inner_nc, outer_nc, 4, 4), jnp.float32),
        "bn_gamma": 1.0 + 0.1 * jax.random.normal(k_g, (outer_nc,), jnp.float32),
        "bn_beta": 0.1 * jax.random.normal(k_b, (outer_nc,), jnp.float32),
    }

    out = jax.jit(unet_innermost_forward)(x, params)
    out = jax.block_until_ready(out)

    ref = _reference(x, params)
    assert out.shape == (N, input_nc + outer_nc, H, W), out.shape
    err = float(jnp.max(jnp.abs(out - ref)))
    # bf16 MXU inputs (f32 accumulation) vs f32 reference -> loosened tolerance.
    assert jnp.allclose(out, ref, atol=5e-2, rtol=5e-2), err

    print("KERNEL_OK")
</pallas_src>

<mosaic_0001>
module attributes {stable_mosaic.version = 11 : i64} {
  func.func @_mm1_kernel(%arg0: i32, %arg1: i32, %arg2: i32, %arg3: memref<1x128x128xbf16, #tpu.memory_space<vmem>>, %arg4: memref<1x128x128xbf16, #tpu.memory_space<vmem>>, %arg5: memref<1x128x128xbf16, #tpu.memory_space<vmem>>) attributes {dimension_semantics = [#tpu.dimension_semantics<parallel>, #tpu.dimension_semantics<parallel>, #tpu.dimension_semantics<parallel>], iteration_bounds = array<i64: 1, 1, 1>, scalar_prefetch = 0 : i64, scratch_operands = 0 : i64, tpu.core_type = #tpu.core_type<tc>, window_params = [{transform_indices = @transform_0, window_bounds = array<i64: 1, 128, 128>}, {transform_indices = @transform_1, window_bounds = array<i64: 1, 128, 128>}, {transform_indices = @transform_2, window_bounds = array<i64: 1, 128, 128>}]} {
    %c0 = arith.constant 0 : index
    %c0_0 = arith.constant 0 : index
    %c0_1 = arith.constant 0 : index
    %0 = vector.load %arg3[%c0, %c0_0, %c0_1] : memref<1x128x128xbf16, #tpu.memory_space<vmem>>, vector<1x128x128xbf16>
    %1 = vector.shape_cast %0 : vector<1x128x128xbf16> to vector<128x128xbf16>
    %c0_2 = arith.constant 0 : index
    %c0_3 = arith.constant 0 : index
    %c0_4 = arith.constant 0 : index
    %2 = vector.load %arg4[%c0_2, %c0_3, %c0_4] : memref<1x128x128xbf16, #tpu.memory_space<vmem>>, vector<1x128x128xbf16>
    %3 = vector.shape_cast %2 : vector<1x128x128xbf16> to vector<128x128xbf16>
    %cst = arith.constant dense<0.000000e+00> : vector<128x128xf32>
    %4 = tpu.matmul %1, %3, %cst {dimension_numbers = #tpu.dot_dimension_numbers<[1], [0], [0], [1], [0, 0, 1, 1], [], []>} : vector<128x128xbf16>, vector<128x128xbf16>, vector<128x128xf32> -> vector<128x128xf32>
    %cst_5 = arith.constant 0.000000e+00 : f32
    %5 = vector.broadcast %cst_5 : f32 to vector<128x128xf32>
    %6 = arith.maximumf %4, %5 : vector<128x128xf32>
    %7 = arith.truncf %6 : vector<128x128xf32> to vector<128x128xbf16>
    %c0_6 = arith.constant 0 : index
    %c0_7 = arith.constant 0 : index
    %c0_8 = arith.constant 0 : index
    %8 = vector.load %arg5[%c0_6, %c0_7, %c0_8] : memref<1x128x128xbf16, #tpu.memory_space<vmem>>, vector<1x128x128xbf16>
    %9 = vector.shape_cast %8 : vector<1x128x128xbf16> to vector<128x128xbf16>
    %10 = vector.shape_cast %7 : vector<128x128xbf16> to vector<1x128x128xbf16>
    tpu.vector_store %arg5[%c0_6, %c0_7, %c0_8], %10 {strides = array<i32>} : memref<1x128x128xbf16, #tpu.memory_space<vmem>>, vector<1x128x128xbf16>,
    return
  }
  func.func @transform_0(%arg0: i32, %arg1: i32, %arg2: i32) -> (i32, i32, i32) {
    %c0_i32 = arith.constant 0 : i32
    %c0_i32_0 = arith.constant 0 : i32
    return %arg0, %arg1, %c0_i32 : i32, i32, i32
  }
  func.func @transform_1(%arg0: i32, %arg1: i32, %arg2: i32) -> (i32, i32, i32) {
    %c0_i32 = arith.constant 0 : i32
    %c0_i32_0 = arith.constant 0 : i32
    return %arg0, %c0_i32, %arg2 : i32, i32, i32
  }
  func.func @transform_2(%arg0: i32, %arg1: i32, %arg2: i32) -> (i32, i32, i32) {
    %c0_i32 = arith.constant 0 : i32
    return %arg0, %arg1, %arg2 : i32, i32, i32
  }
}

module attributes {stable_mosaic.version = 11 : i64} {
  func.func @_bn_apply_kernel(%arg0: i32, %arg1: i32, %arg2: memref<1x128x128xf32, #tpu.memory_space<vmem>>, %arg3: memref<1x128xf32, #tpu.memory_space<vmem>>, %arg4: memref<1x128xf32, #tpu.memory_space<vmem>>, %arg5: memref<1x128x128xf32, #tpu.memory_space<vmem>>) attributes {dimension_semantics = [#tpu.dimension_semantics<parallel>, #tpu.dimension_semantics<parallel>], iteration_bounds = array<i64: 4, 1>, scalar_prefetch = 0 : i64, scratch_operands = 0 : i64, tpu.core_type = #tpu.core_type<tc>, window_params = [{transform_indices = @transform_0, window_bounds = array<i64: 1, 128, 128>}, {pipeline_mode = #tpu.pipeline_mode<synchronous>, transform_indices = @transform_1, window_bounds = array<i64: 1, 128>}, {pipeline_mode = #tpu.pipeline_mode<synchronous>, transform_indices = @transform_2, window_bounds = array<i64: 1, 128>}, {transform_indices = @transform_3, window_bounds = array<i64: 1, 128, 128>}]} {
    %c0 = arith.constant 0 : index
    %c0_0 = arith.constant 0 : index
    %c0_1 = arith.constant 0 : index
    %0 = vector.load %arg2[%c0, %c0_0, %c0_1] : memref<1x128x128xf32, #tpu.memory_space<vmem>>, vector<1x128x128xf32>
    %1 = vector.shape_cast %0 : vector<1x128x128xf32> to vector<128x128xf32>
    %c0_2 = arith.constant 0 : index
    %c0_3 = arith.constant 0 : index
    %2 = vector.load %arg3[%c0_2, %c0_3] : memref<1x128xf32, #tpu.memory_space<vmem>>, vector<1x128xf32>
    %3 = vector.broadcast %2 : vector<1x128xf32> to vector<128x128xf32>
    %4 = arith.mulf %1, %3 : vector<128x128xf32>
    %c0_4 = arith.constant 0 : index
    %c0_5 = arith.constant 0 : index
    %5 = vector.load %arg4[%c0_4, %c0_5] : memref<1x128xf32, #tpu.memory_space<vmem>>, vector<1x128xf32>
    %6 = vector.broadcast %5 : vector<1x128xf32> to vector<128x128xf32>
    %7 = arith.addf %4, %6 : vector<128x128xf32>
    %c0_6 = arith.constant 0 : index
    %c0_7 = arith.constant 0 : index
    %c0_8 = arith.constant 0 : index
    %8 = vector.load %arg5[%c0_6, %c0_7, %c0_8] : memref<1x128x128xf32, #tpu.memory_space<vmem>>, vector<1x128x128xf32>
    %9 = vector.shape_cast %8 : vector<1x128x128xf32> to vector<128x128xf32>
    %10 = vector.shape_cast %7 : vector<128x128xf32> to vector<1x128x128xf32>
    tpu.vector_store %arg5[%c0_6, %c0_7, %c0_8], %10 {strides = array<i32>} : memref<1x128x128xf32, #tpu.memory_space<vmem>>, vector<1x128x128xf32>,
    return
  }
  func.func @transform_0(%arg0: i32, %arg1: i32) -> (i32, i32, i32) {
    %c0_i32 = arith.constant 0 : i32
    %c0_i32_0 = arith.constant 0 : i32
    return %arg0, %arg1, %c0_i32 : i32, i32, i32
  }
  func.func @transform_1(%arg0: i32, %arg1: i32) -> (i32, i32) {
    %c0_i32 = arith.constant 0 : i32
    %c0_i32_0 = arith.constant 0 : i32
    %c0_i32_1 = arith.constant 0 : i32
    return %c0_i32, %c0_i32_0 : i32, i32
  }
  func.func @transform_2(%arg0: i32, %arg1: i32) -> (i32, i32) {
    %c0_i32 = arith.constant 0 : i32
    %c0_i32_0 = arith.constant 0 : i32
    %c0_i32_1 = arith.constant 0 : i32
    return %c0_i32, %c0_i32_0 : i32, i32
  }
  func.func @transform_3(%arg0: i32, %arg1: i32) -> (i32, i32, i32) {
    %c0_i32 = arith.constant 0 : i32
    %c0_i32_0 = arith.constant 0 : i32
    return %arg0, %arg1, %c0_i32 : i32, i32, i32
  }
}

module attributes {stable_mosaic.version = 11 : i64} {
  func.func @_mm1_stats_kernel(%arg0: i32, %arg1: i32, %arg2: i32, %arg3: memref<1x128x128xbf16, #tpu.memory_space<vmem>>, %arg4: memref<1x128x128xbf16, #tpu.memory_space<vmem>>, %arg5: memref<1x128x128xf32, #tpu.memory_space<vmem>>, %arg6: memref<1x1x2x128xf32, #tpu.memory_space<vmem>>) attributes {dimension_semantics = [#tpu.dimension_semantics<parallel>, #tpu.dimension_semantics<parallel>, #tpu.dimension_semantics<parallel>], iteration_bounds = array<i64: 4, 1, 1>, scalar_prefetch = 0 : i64, scratch_operands = 0 : i64, tpu.core_type = #tpu.core_type<tc>, window_params = [{transform_indices = @transform_0, window_bounds = array<i64: 1, 128, 128>}, {transform_indices = @transform_1, window_bounds = array<i64: 1, 128, 128>}, {transform_indices = @transform_2, window_bounds = array<i64: 1, 128, 128>}, {transform_indices = @transform_3, window_bounds = array<i64: 1, 1, 2, 128>}]} {
    %c0 = arith.constant 0 : index
    %c0_0 = arith.constant 0 : index
    %c0_1 = arith.constant 0 : index
    %0 = vector.load %arg3[%c0, %c0_0, %c0_1] : memref<1x128x128xbf16, #tpu.memory_space<vmem>>, vector<1x128x128xbf16>
    %1 = vector.shape_cast %0 : vector<1x128x128xbf16> to vector<128x128xbf16>
    %c0_2 = arith.constant 0 : index
    %c0_3 = arith.constant 0 : index
    %c0_4 = arith.constant 0 : index
    %2 = vector.load %arg4[%c0_2, %c0_3, %c0_4] : memref<1x128x128xbf16, #tpu.memory_space<vmem>>, vector<1x128x128xbf16>
    %3 = vector.shape_cast %2 : vector<1x128x128xbf16> to vector<128x128xbf16>
    %cst = arith.constant dense<0.000000e+00> : vector<128x128xf32>
    %4 = tpu.matmul %1, %3, %cst {dimension_numbers = #tpu.dot_dimension_numbers<[1], [0], [0], [1], [0, 0, 1, 1], [], []>} : vector<128x128xbf16>, vector<128x128xbf16>, vector<128x128xf32> -> vector<128x128xf32>
    %c0_5 = arith.constant 0 : index
    %c0_6 = arith.constant 0 : index
    %c0_7 = arith.constant 0 : index
    %5 = vector.load %arg5[%c0_5, %c0_6, %c0_7] : memref<1x128x128xf32, #tpu.memory_space<vmem>>, vector<1x128x128xf32>
    %6 = vector.shape_cast %5 : vector<1x128x128xf32> to vector<128x128xf32>
    %7 = vector.shape_cast %4 : vector<128x128xf32> to vector<1x128x128xf32>
    tpu.vector_store %arg5[%c0_5, %c0_6, %c0_7], %7 {strides = array<i32>} : memref<1x128x128xf32, #tpu.memory_space<vmem>>, vector<1x128x128xf32>,
    %cst_8 = arith.constant dense<0.000000e+00> : vector<128xf32>
    %8 = vector.multi_reduction <add>, %4, %cst_8 [0] : vector<128x128xf32> to vector<128xf32>
    %9 = vector.shape_cast %8 : vector<128xf32> to vector<1x128xf32>
    %c0_9 = arith.constant 0 : index
    %c0_10 = arith.constant 0 : index
    %c0_11 = arith.constant 0 : index
    %c0_12 = arith.constant 0 : index
    %10 = vector.load %arg6[%c0_9, %c0_10, %c0_11, %c0_12] : memref<1x1x2x128xf32, #tpu.memory_space<vmem>>, vector<1x1x1x128xf32>
    %11 = vector.shape_cast %10 : vector<1x1x1x128xf32> to vector<1x128xf32>
    %12 = vector.shape_cast %9 : vector<1x128xf32> to vector<1x1x1x128xf32>
    tpu.vector_store %arg6[%c0_9, %c0_10, %c0_11, %c0_12], %12 {strides = array<i32>} : memref<1x1x2x128xf32, #tpu.memory_space<vmem>>, vector<1x1x1x128xf32>,
    %13 = arith.mulf %4, %4 : vector<128x128xf32>
    %cst_13 = arith.constant dense<0.000000e+00> : vector<128xf32>
    %14 = vector.multi_reduction <add>, %13, %cst_13 [0] : vector<128x128xf32> to vector<128xf32>
    %15 = vector.shape_cast %14 : vector<128xf32> to vector<1x128xf32>
    %c0_14 = arith.constant 0 : index
    %c0_15 = arith.constant 0 : index
    %c1 = arith.constant 1 : index
    %c0_16 = arith.constant 0 : index
    %16 = vector.load %arg6[%c0_14, %c0_15, %c1, %c0_16] : memref<1x1x2x128xf32, #tpu.memory_space<vmem>>, vector<1x1x1x128xf32>
    %17 = vector.shape_cast %16 : vector<1x1x1x128xf32> to vector<1x128xf32>
    %18 = vector.shape_cast %15 : vector<1x128xf32> to vector<1x1x1x128xf32>
    tpu.vector_store %arg6[%c0_14, %c0_15, %c1, %c0_16], %18 {strides = array<i32>} : memref<1x1x2x128xf32, #tpu.memory_space<vmem>>, vector<1x1x1x128xf32>,
    return
  }
  func.func @transform_0(%arg0: i32, %arg1: i32, %arg2: i32) -> (i32, i32, i32) {
    %c0_i32 = arith.constant 0 : i32
    %c0_i32_0 = arith.constant 0 : i32
    return %arg0, %arg1, %c0_i32 : i32, i32, i32
  }
  func.func @transform_1(%arg0: i32, %arg1: i32, %arg2: i32) -> (i32, i32, i32) {
    %c0_i32 = arith.constant 0 : i32
    %c0_i32_0 = arith.constant 0 : i32
    return %arg0, %c0_i32, %arg2 : i32, i32, i32
  }
  func.func @transform_2(%arg0: i32, %arg1: i32, %arg2: i32) -> (i32, i32, i32) {
    %c0_i32 = arith.constant 0 : i32
    return %arg0, %arg1, %arg2 : i32, i32, i32
  }
  func.func @transform_3(%arg0: i32, %arg1: i32, %arg2: i32) -> (i32, i32, i32, i32) {
    %c0_i32 = arith.constant 0 : i32
    %c0_i32_0 = arith.constant 0 : i32
    return %arg0, %arg1, %c0_i32, %arg2 : i32, i32, i32, i32
  }
}

</mosaic_0001>

<bundles_post_ra>
// kernel: unet_innermost_forward.3
= control target key start
LH: loop header
LB: loop body
LE: loop exit
PB: predicated region body
PF: predicated region fallthrough
CT: control target
= control target key end

     0   :  { %s599_s1 = inlined_call_operand.vmem [shape: bf16[1,128,128], index: 1, kind: input, shape index: {}]   ;;  %s600_s0 = inlined_call_operand.vmem [shape: bf16[1,128,128], index: 0, kind: input, shape index: {}]   ;;  %s601_s2 = inlined_call_operand.vmem [shape: bf16[1,128,128], index: 2, kind: output, shape index: {}]  }
   0x1   :  { %v496_v0 = vld [vmem:[%s599_s1 + $0x38] sm:$0xff]   ;;  %v497_v1 = vld [vmem:[%s599_s1 + $0x30] sm:$0xff]   ;;  %v498_v2 = vld [vmem:[%s599_s1 + $0x28] sm:$0xff]  }
   0x2   :  { %448 = vmatprep.subr.bf16.mxu0 %v496_v0  ;;  %480 = vmatprep.subr.bf16.mxu1 %v496_v0  ;;  %v499_v3 = vld [vmem:[%s599_s1 + $0x20] sm:$0xff]   ;;  %v500_v6 = vld [vmem:[%s599_s1 + $0x18] sm:$0xff]   ;;  %v501_v7 = vld [vmem:[%s599_s1 + $0x10] sm:$0xff]  }
   0x3   :  { %449 = vmatpush3.bf16.msra.mxu0 %v496_v0  ;;  %488 = vmatpush3.bf16.msra.mxu1 %v496_v0  ;;  %v504_v4 = vld [vmem:[%s600_s0] sm:$0xff]   ;;  %v502_v8 = vld [vmem:[%s599_s1 + $0x8] sm:$0xff]   ;;  %v508_v12 = vld [vmem:[%s600_s0 + $0x10] sm:$0xff]  }
   0x4   :  { %450 = vmatprep.subr.bf16.mxu0 %v497_v1  ;;  %481 = vmatprep.subr.bf16.mxu1 %v497_v1  ;;  %v505_v5 = vld [vmem:[%s600_s0 + $0x20] sm:$0xff]   ;;  %v506_v10 = vld [vmem:[%s600_s0 + $0x8] sm:$0xff]   ;;  %v509_v13 = vld [vmem:[%s600_s0 + $0x30] sm:$0xff]  }
   0x5   :  { %464 = vmatprep.mubr.bf16.mxu0 %v504_v4  ;;  %472 = vmatprep.mubr.bf16.mxu1 %v505_v5  ;;  %v503_v9 = vld [vmem:[%s599_s1] sm:$0xff]   ;;  %v507_v11 = vld [vmem:[%s600_s0 + $0x28] sm:$0xff]   ;;  %v510_v14 = vld [vmem:[%s600_s0 + $0x18] sm:$0xff]  }
   0x6   :  { %v511_v15 = vld [vmem:[%s600_s0 + $0x38] sm:$0xff]  }
   0x7   :  { %451 = vmatpush3.bf16.msra.mxu0 %v497_v1  ;;  %489 = vmatpush3.bf16.msra.mxu1 %v497_v1 }
   0x8   :  { %452 = vmatprep.subr.bf16.mxu0 %v498_v2  ;;  %482 = vmatprep.subr.bf16.mxu1 %v498_v2 }
   0xb   :  { %453 = vmatpush3.bf16.msra.mxu0 %v498_v2  ;;  %490 = vmatpush3.bf16.msra.mxu1 %v498_v2 }
   0xc   :  { %454 = vmatprep.subr.bf16.mxu0 %v499_v3  ;;  %483 = vmatprep.subr.bf16.mxu1 %v499_v3 }
   0xf   :  { %455 = vmatpush3.bf16.msra.mxu0 %v499_v3  ;;  %491 = vmatpush3.bf16.msra.mxu1 %v499_v3 }
  0x10   :  { %456 = vmatprep.subr.bf16.mxu0 %v500_v6  ;;  %484 = vmatprep.subr.bf16.mxu1 %v500_v6 }
  0x13   :  { %457 = vmatpush3.bf16.msra.mxu0 %v500_v6  ;;  %492 = vmatpush3.bf16.msra.mxu1 %v500_v6 }
  0x14   :  { %458 = vmatprep.subr.bf16.mxu0 %v501_v7  ;;  %485 = vmatprep.subr.bf16.mxu1 %v501_v7 }
  0x17   :  { %459 = vmatpush3.bf16.msra.mxu0 %v501_v7  ;;  %493 = vmatpush3.bf16.msra.mxu1 %v501_v7 }
  0x18   :  { %460 = vmatprep.subr.bf16.mxu0 %v502_v8  ;;  %486 = vmatprep.subr.bf16.mxu1 %v502_v8 }
  0x1b   :  { %461 = vmatpush3.bf16.msra.mxu0 %v502_v8  ;;  %494 = vmatpush3.bf16.msra.mxu1 %v502_v8 }
  0x1c   :  { %462 = vmatprep.subr.bf16.mxu0 %v503_v9  ;;  %487 = vmatprep.subr.bf16.mxu1 %v503_v9 }
  0x1f   :  { %463 = vmatpush3.bf16.msra.mxu0 %v503_v9  ;;  %495 = vmatpush3.bf16.msra.mxu1 %v503_v9 }
  0x22   :  { %465 = vmatmul.mubr.bf16.vlgmr.msra.gmra.mxu0 %v506_v10  ;;  %473 = vmatmul.mubr.bf16.vlgmr.msra.gmra.mxu1 %v507_v11 }
  0x23   :  { %468 = vmatprep.mubr.bf16.mxu0 %v508_v12  ;;  %476 = vmatprep.mubr.bf16.mxu1 %v509_v13 }
  0x2a   :  { %469 = vmatmul.mubr.bf16.gmra.mxu0 %v510_v14  ;;  %477 = vmatmul.mubr.bf16.gmra.mxu1 %v511_v15 }
  0xe2   :  { %v466_v16 = vpop.f32.mrf.mxu0  ;;  %v474_v17 = vpop.f32.mrf.mxu1 }
  0xe3   :  { %v239_v22 = vmax.f32 %v466_v16, 0.0  ;;  %v247_v23 = vmax.f32 %v474_v17, 0.0 }
  0xe4   :  { %v174_v18 = vpop.f32.mrf.mxu0  ;;  %v206_v19 = vpop.f32.mrf.mxu1 }
  0xe5   :  { %v237_v26 = vmax.f32 %v174_v18, 0.0  ;;  %v245_v27 = vmax.f32 %v206_v19, 0.0 }
  0xe6   :  { %v467_v20 = vpop.f32.mrf.mxu0  ;;  %v475_v21 = vpop.f32.mrf.mxu1 }
  0xe7   :  { %v240_v24 = vmax.f32 %v467_v20, 0.0  ;;  %v248_v25 = vmax.f32 %v475_v21, 0.0 }
  0xe8   :  { %v177_v28 = vpop.f32.mrf.mxu0  ;;  %v209_v29 = vpop.f32.mrf.mxu1 }
  0xe9   :  { %v393_v30 = vpack.c.bf16 %v240_v24, %v239_v22  ;;  %v413_v31 = vpack.c.bf16 %v248_v25, %v247_v23  ;;  %v238_v32 = vmax.f32 %v177_v28, 0.0  ;;  %v246_v33 = vmax.f32 %v209_v29, 0.0 }
  0xea   :  { %v470_v34 = vpop.f32.mrf.mxu0  ;;  %v478_v35 = vpop.f32.mrf.mxu1 }
  0xeb   :  { %425 = vst [vmem:[%s601_s2 + $0x8] sm:$0xff] %v393_v30   ;;  %429 = vst [vmem:[%s601_s2 + $0x28] sm:$0xff] %v413_v31   ;;  %v388_v36 = vpack.c.bf16 %v238_v32, %v237_v26  ;;  %v408_v37 = vpack.c.bf16 %v246_v33, %v245_v27  ;;  %v243_v42 = vmax.f32 %v470_v34, 0.0  ;;  %v251_v43 = vmax.f32 %v478_v35, 0.0 }
  0xec   :  { %v190_v38 = vpop.f32.mrf.mxu0  ;;  %v222_v39 = vpop.f32.mrf.mxu1 }
  0xed   :  { %389 = vst [vmem:[%s601_s2] sm:$0xff] %v388_v36   ;;  %428 = vst [vmem:[%s601_s2 + $0x20] sm:$0xff] %v408_v37   ;;  %v241_v46 = vmax.f32 %v190_v38, 0.0  ;;  %v249_v47 = vmax.f32 %v222_v39, 0.0 }
  0xee   :  { %v471_v40 = vpop.f32.mrf.mxu0  ;;  %v479_v41 = vpop.f32.mrf.mxu1 }
  0xef   :  { %v244_v44 = vmax.f32 %v471_v40, 0.0  ;;  %v252_v45 = vmax.f32 %v479_v41, 0.0 }
  0xf0   :  { %v193_v48 = vpop.f32.mrf.mxu0  ;;  %v225_v49 = vpop.f32.mrf.mxu1 }
  0xf1   :  { %v403_v50 = vpack.c.bf16 %v244_v44, %v243_v42  ;;  %v423_v51 = vpack.c.bf16 %v252_v45, %v251_v43  ;;  %v242_v52 = vmax.f32 %v193_v48, 0.0  ;;  %v250_v53 = vmax.f32 %v225_v49, 0.0 }
  0xf3   :  { %427 = vst [vmem:[%s601_s2 + $0x18] sm:$0xff] %v403_v50   ;;  %431 = vst [vmem:[%s601_s2 + $0x38] sm:$0xff] %v423_v51   ;;  %v398_v54 = vpack.c.bf16 %v242_v52, %v241_v46  ;;  %v418_v55 = vpack.c.bf16 %v250_v53, %v249_v47 }
  0xf5   :  { %426 = vst [vmem:[%s601_s2 + $0x10] sm:$0xff] %v398_v54   ;;  %430 = vst [vmem:[%s601_s2 + $0x30] sm:$0xff] %v418_v55  }

// kernel: reverse.1
= control target key start
LH: loop header
LB: loop body
LE: loop exit
PB: predicated region body
PF: predicated region fallthrough
CT: control target
= control target key end

     0   :  { %v103_v8 = vld [vmem:[#allocation1 + $0xe] sm:$0x1]  ;;  %v135_v10 = vld [vmem:[#allocation1 + $0xc] sm:$0x1]  ;;  %v167_v11 = vld [vmem:[#allocation1 + $0xa] sm:$0x1]  ;;  %v337_v33 = vlaneseq  ;;  %s633_s0 = inlined_call_operand.vmem [shape: bf16[8,4,2,2], index: 0, kind: input, shape index: {}]   ;;  %s634_s1 = inlined_call_operand.vmem [shape: bf16[8,4,2,2], index: 1, kind: output, shape index: {}]  }
   0x1   :  { %v19_v0 = vld [vmem:[%s633_s0] sm:$0x1]  ;;  %v21_v1 = vld [vmem:[%s633_s0 + $0x1] sm:$0x1]  ;;  %v23_v2 = vld [vmem:[%s633_s0 + $0x2] sm:$0x1]  ;;  %v104_v9 = vunpack.c.l.bf16 %v103_v8  ;;  %v136_v13 = vunpack.c.l.bf16 %v135_v10  ;;  %v168_v14 = vunpack.c.l.bf16 %v167_v11 }
   0x2   :  { %20 = vst [vmem:[#allocation1 + $0x1] sm:$0x1] %v19_v0  ;;  %22 = vst [vmem:[#allocation1 + $0x3] sm:$0x1] %v21_v1  ;;  %v25_v3 = vld [vmem:[%s633_s0 + $0x3] sm:$0x1] }
   0x3   :  { %24 = vst [vmem:[#allocation1 + $0x5] sm:$0x1] %v23_v2  ;;  %v27_v4 = vld [vmem:[%s633_s0 + $0x4] sm:$0x1]  ;;  %v29_v5 = vld [vmem:[%s633_s0 + $0x5] sm:$0x1] }
   0x4   :  { %26 = vst [vmem:[#allocation1 + $0x7] sm:$0x1] %v25_v3  ;;  %28 = vst [vmem:[#allocation1 + $0x9] sm:$0x1] %v27_v4  ;;  %v31_v6 = vld [vmem:[%s633_s0 + $0x6] sm:$0x1] }
   0x5   :  { %30 = vst [vmem:[#allocation1 + $0xb] sm:$0x1] %v29_v5  ;;  %v33_v7 = vld [vmem:[%s633_s0 + $0x7] sm:$0x1]  ;;  %32 = vst [vmem:[#allocation1 + $0xd] sm:$0x1] %v31_v6 }
   0x6   :  { %34 = vst [vmem:[#allocation1 + $0xf] sm:$0x1] %v33_v7  ;;  %v199_v12 = vld [vmem:[#allocation1 + $0x8] sm:$0x1]  ;;  %v231_v16 = vld [vmem:[#allocation1 + $0x6] sm:$0x1] }
   0x7   :  { %v200_v15 = vunpack.c.l.bf16 %v199_v12  ;;  %v263_v17 = vld [vmem:[#allocation1 + $0x4] sm:$0x1]  ;;  %v295_v18 = vld [vmem:[#allocation1 + $0x2] sm:$0x1]  ;;  %107 = vst [vmem:[#allocation0 + $0x70] sm:$0x3] %v104_v9  ;;  %v232_v19 = vunpack.c.l.bf16 %v231_v16 }
   0x8   :  { %v264_v20 = vunpack.c.l.bf16 %v263_v17  ;;  %v296_v21 = vunpack.c.l.bf16 %v295_v18  ;;  %v324_v22 = vld [vmem:[#allocation1] sm:$0x1]  ;;  %139 = vst [vmem:[#allocation0 + $0x60] sm:$0x3] %v136_v13  ;;  %171 = vst [vmem:[#allocation0 + $0x50] sm:$0x3] %v168_v14 }
   0x9   :  { %203 = vst [vmem:[#allocation0 + $0x40] sm:$0x3] %v200_v15  ;;  %v325_v23 = vunpack.c.l.bf16 %v324_v22  ;;  %235 = vst [vmem:[#allocation0 + $0x30] sm:$0x3] %v232_v19  ;;  %v279_v25 = vld [vmem:[#allocation1 + $0x3] sm:$0x1] }
   0xa   :  { %267 = vst [vmem:[#allocation0 + $0x20] sm:$0x3] %v264_v20  ;;  %299 = vst [vmem:[#allocation0 + $0x10] sm:$0x3] %v296_v21  ;;  %v247_v24 = vld [vmem:[#allocation1 + $0x5] sm:$0x1]  ;;  %v280_v31 = vunpack.c.l.bf16 %v279_v25 }
   0xb   :  { %v310_v26 = vld [vmem:[#allocation1 + $0x1] sm:$0x1]  ;;  %327 = vst [vmem:[#allocation0] sm:$0x3] %v325_v23  ;;  %v183_v28 = vld [vmem:[#allocation1 + $0x9] sm:$0x1]  ;;  %v248_v30 = vunpack.c.l.bf16 %v247_v24 }
   0xc   :  { %v151_v27 = vld [vmem:[#allocation1 + $0xb] sm:$0x1]  ;;  %v215_v29 = vld [vmem:[#allocation1 + $0x7] sm:$0x1]  ;;  %v311_v32 = vunpack.c.l.bf16 %v310_v26  ;;  %v119_v35 = vld [vmem:[#allocation1 + $0xd] sm:$0x1]  ;;  %v184_v37 = vunpack.c.l.bf16 %v183_v28 }
   0xd   :  { %v87_v34 = vld [vmem:[#allocation1 + $0xf] sm:$0x1]  ;;  %v152_v36 = vunpack.c.l.bf16 %v151_v27  ;;  %v216_v38 = vunpack.c.l.bf16 %v215_v29  ;;  %v120_v40 = vunpack.c.l.bf16 %v119_v35  ;;  %251 = vst [vmem:[#allocation0 + $0x28] sm:$0x3] %v248_v30  ;;  %283 = vst [vmem:[#allocation0 + $0x18] sm:$0x3] %v280_v31 }
   0xe   :  { %v88_v39 = vunpack.c.l.bf16 %v87_v34  ;;  %314 = vst [vmem:[#allocation0 + $0x8] sm:$0x3] %v311_v32  ;;  %187 = vst [vmem:[#allocation0 + $0x48] sm:$0x3] %v184_v37  ;;  %v413_v41 = vld [vmem:[#allocation0 + $0x77] ss:$-1 sm:$0xff] }
   0xf   :  { %155 = vst [vmem:[#allocation0 + $0x58] sm:$0x3] %v152_v36  ;;  %219 = vst [vmem:[#allocation0 + $0x38] sm:$0x3] %v216_v38  ;;  %v338_v42 = vshrl.u32 %v337_v33, 7  ;;  %v414_v45 = vrot.slane %v413_v41, 6 }
  0x10   :  { %91 = vst [vmem:[#allocation0 + $0x78] sm:$0x3] %v88_v39  ;;  %123 = vst [vmem:[#allocation0 + $0x68] sm:$0x3] %v120_v40  ;;  %v385_v43 = vld [vmem:[#allocation0 + $0x57] ss:$-1 sm:$0xff] }
  0x11   :  { %v399_v44 = vld [vmem:[#allocation0 + $0x47] ss:$-1 sm:$0xff]  ;;  %v330_v46 = vld [vmem:[#allocation0 + $0x17] ss:$-1 sm:$0xff]  ;;  %v386_v53 = vrot.slane %v385_v43, 6  ;;  %415 = vst [vmem:[#allocation2 + $0x30] sm:$0xff] %v414_v45 }
  0x12   :  { %v357_v47 = vld [vmem:[#allocation0 + $0x37] ss:$-1 sm:$0xff]  ;;  %v371_v48 = vld [vmem:[#allocation0 + $0x27] ss:$-1 sm:$0xff]  ;;  %v331_v49 = vrot.slane %v330_v46, 6  ;;  %v400_v55 = vrot.slane %v399_v44, 6 }
  0x13   :  { %v343_v50 = vld [vmem:[#allocation0 + $0x7] ss:$-1 sm:$0xff]  ;;  %v358_v51 = vrot.slane %v357_v47, 6  ;;  %v372_v52 = vrot.slane %v371_v48, 6  ;;  %vm339_vm0 = vcmp.lt.s32.totalorder %v338_v42, 2  ;;  %387 = vst [vmem:[#allocation2 + $0x20] sm:$0xff] %v386_v53 }
  0x14   :  { %v344_v54 = vrot.slane %v343_v50, 6  ;;  %v427_v56 = vld [vmem:[#allocation0 + $0x67] ss:$-1 sm:$0xff]  ;;  %332 = vst [vmem:[#allocation2] sm:$0xff] %v331_v49  ;;  %v335_v58 = vld [vmem:[#allocation0 + $0x1f] ss:$-1 sm:$0xff] }
  0x15   :  { %359 = vst [vmem:[#allocation2 + $0x10] sm:$0xff] %v358_v51  ;;  %373 = vst [vmem:[#allocation2 + $0x18] sm:$0xff] %v372_v52  ;;  %v428_v57 = vrot.slane %v427_v56, 6  ;;  %v348_v59 = vld [vmem:[#allocation0 + $0xf] ss:$-1 sm:$0xff]  ;;  %v336_v61 = vrot.slane %v335_v58, 6 }
  0x16   :  { %345 = vst [vmem:[#allocation2 + $0x8] sm:$0xff] %v344_v54  ;;  %v376_v60 = vld [vmem:[#allocation0 + $0x2f] ss:$-1 sm:$0xff]  ;;  %401 = vst [vmem:[#allocation2 + $0x28] sm:$0xff] %v400_v55  ;;  %v349_v62 = vrot.slane %v348_v59, 6  ;;  %v587_v13 = vmov 0.0  }
  0x17   :  { %v362_v63 = vld [vmem:[#allocation0 + $0x3f] ss:$-1 sm:$0xff]  ;;  %v377_v0 = vrot.slane %v376_v60, 6  ;;  %429 = vst [vmem:[#allocation2 + $0x38] sm:$0xff] %v428_v57  ;;  %v404_v3 = vld [vmem:[#allocation0 + $0x4f] ss:$-1 sm:$0xff] }
  0x18   :  { %v363_v1 = vrot.slane %v362_v63, 6  ;;  %v390_v2 = vld [vmem:[#allocation0 + $0x5f] ss:$-1 sm:$0xff]  ;;  %340 = vst.msk [vmem:[#allocation2] sm:$0xff] %vm339_vm0, %v336_v61  ;;  %353 = vst.msk [vmem:[#allocation2 + $0x8] sm:$0xff] %vm339_vm0, %v349_v62  ;;  %v405_v5 = vrot.slane %v404_v3, 6 }
  0x19   :  { %381 = vst.msk [vmem:[#allocation2 + $0x18] sm:$0xff] %vm339_vm0, %v377_v0  ;;  %v391_v4 = vrot.slane %v390_v2, 6  ;;  %v418_v6 = vld [vmem:[#allocation0 + $0x7f] ss:$-1 sm:$0xff]  ;;  %v432_v7 = vld [vmem:[#allocation0 + $0x6f] ss:$-1 sm:$0xff] }
  0x1a   :  { %367 = vst.msk [vmem:[#allocation2 + $0x10] sm:$0xff] %vm339_vm0, %v363_v1  ;;  %v419_v8 = vrot.slane %v418_v6, 6  ;;  %v433_v9 = vrot.slane %v432_v7, 6  ;;  %409 = vst.msk [vmem:[#allocation2 + $0x28] sm:$0xff] %vm339_vm0, %v405_v5 }
  0x1b   :  { %395 = vst.msk [vmem:[#allocation2 + $0x20] sm:$0xff] %vm339_vm0, %v391_v4 }
  0x1c   :  { %423 = vst.msk [vmem:[#allocation2 + $0x30] sm:$0xff] %vm339_vm0, %v419_v8  ;;  %437 = vst.msk [vmem:[#allocation2 + $0x38] sm:$0xff] %vm339_vm0, %v433_v9 }
  0x1f   :  { %v443_v10 = vld [vmem:[#allocation2] sm:$0x3]  ;;  %v449_v11 = vld [vmem:[#allocation2 + $0x8] sm:$0x3] }
  0x20   :  { %v464_v12 = vld [vmem:[#allocation2 + $0x18] sm:$0x3]  ;;  %v444_v14 = vpack.c.bf16 %v587_v13, %v443_v10  ;;  %v450_v15 = vpack.c.bf16 %v587_v13, %v449_v11 }
  0x21   :  { %v456_v16 = vld [vmem:[#allocation2 + $0x10] sm:$0x3]  ;;  %v465_v17 = vpack.c.bf16 %v587_v13, %v464_v12  ;;  %v480_v20 = vld [vmem:[#allocation2 + $0x28] sm:$0x3] }
  0x22   :  { %v457_v18 = vpack.c.bf16 %v587_v13, %v456_v16  ;;  %v472_v19 = vld [vmem:[#allocation2 + $0x20] sm:$0x3]  ;;  %447 = vst [vmem:[#allocation3] sm:$0x1] %v444_v14  ;;  %454 = vst [vmem:[#allocation3 + $0x1] sm:$0x1] %v450_v15  ;;  %v481_v22 = vpack.c.bf16 %v587_v13, %v480_v20 }
  0x23   :  { %470 = vst [vmem:[#allocation3 + $0x3] sm:$0x1] %v465_v17  ;;  %v473_v21 = vpack.c.bf16 %v587_v13, %v472_v19  ;;  %v488_v23 = vld [vmem:[#allocation2 + $0x30] sm:$0x3]  ;;  %v496_v24 = vld [vmem:[#allocation2 + $0x38] sm:$0x3] }
  0x24   :  { %462 = vst [vmem:[#allocation3 + $0x2] sm:$0x1] %v457_v18  ;;  %v489_v25 = vpack.c.bf16 %v587_v13, %v488_v23  ;;  %v497_v26 = vpack.c.bf16 %v587_v13, %v496_v24  ;;  %486 = vst [vmem:[#allocation3 + $0x5] sm:$0x1] %v481_v22 }
  0x25   :  { %478 = vst [vmem:[#allocation3 + $0x4] sm:$0x1] %v473_v21 }
  0x26   :  { %494 = vst [vmem:[#allocation3 + $0x6] sm:$0x1] %v489_v25  ;;  %502 = vst [vmem:[#allocation3 + $0x7] sm:$0x1] %v497_v26 }
  0x2d   :  { %v531_v27 = vld [vmem:[#allocation3] sm:$0xff] }
  0x2e   :  { %532 = vst [vmem:[%s634_s1] sm:$0xff] %v531_v27 }

// kernel: unet_innermost_forward.5
= control target key start
LH: loop header
LB: loop body
LE: loop exit
PB: predicated region body
PF: predicated region fallthrough
CT: control target
= control target key end

     0   :  { %s458_s12 = smov 0   ;;  %s460_s13 = smov 0   ;;  %s551_s0 = inlined_call_operand.vmem [shape: f32[4,128,128], index: 0, kind: input, shape index: {}]   ;;  %s552_s1 = inlined_call_operand.vmem [shape: f32[1,128], index: 1, kind: input, shape index: {}]   ;;  %s553_s2 = inlined_call_operand.vmem [shape: f32[1,128], index: 2, kind: input, shape index: {}]   ;;  %s554_s3 = inlined_call_operand.vmem [shape: f32[4,128,128], index: 3, kind: output, shape index: {}]  }
   0x1   :  { %s462_s14 = smov 0  }
   0x2 LB: > { %s25_s15 = sadd.s32 1, %s432_s13  ;;  %p379_p0 = scmp.ge.s32.totalorder %s436_s14, 1  ;;  %s436_s14 = sphi %s462_s14, %s13_s14   ;;  %s432_s13 = sphi %s460_s13, %s556_s13   ;;  %s428_s12 = sphi %s458_s12, %s555_s12  }
   0x3   : > { %p27_p1 = scmp.ge.s32.totalorder %s25_s15, 4  ;;  %p158_p2 = scmp.lt.s32.totalorder %s436_s14, 5 }
   0x5   : > { %s558_s15 = smov (%p27_p1, %s25_s15), 0  ;;  %p159_p3 = pnand %p379_p0, %p158_p2 }
   0x6   : > { %p191_p4 = scmp.lt.s32.totalorder (!%p159_p3), %s428_s12, 3 }
   0x7   : > { %162 = sbr.rel (%p159_p3) target bundleno = 29 (0x1d), region = 32 }
   0xc   : > { %s560_s12 = smov (!%p191_p4, %s428_s12), 3  ;;  %v384_v0 = vld [vmem:[%s552_s1] ss:$0 sm:$0xff] }
   0xd   : > { %s388_s16 = sshll.u32 %s560_s12, 7  ;;  %v487_v1 = vld [vmem:[%s553_s2] ss:$0 sm:$0xff] }
   0xe   : > { %s482_s21 = scalar_lea.vmem %s551_s0, %s388_s16  ;;  %s498_s26 = scalar_lea.vmem %s554_s3, %s388_s16 }
   0xf   : > { %v210_v2 = vld [vmem:[%s482_s21] sm:$0xff]  ;;  %v211_v3 = vld [vmem:[%s482_s21 + $0x8] sm:$0xff]  ;;  %v212_v4 = vld [vmem:[%s482_s21 + $0x10] sm:$0xff] }
  0x10   : > { %v233_v5 = vmul.f32 %v384_v0, %v210_v2  ;;  %v234_v6 = vmul.f32 %v384_v0, %v211_v3  ;;  %v235_v7 = vmul.f32 %v384_v0, %v212_v4  ;;  %v213_v8 = vld [vmem:[%s482_s21 + $0x18] sm:$0xff]  ;;  %v214_v9 = vld [vmem:[%s482_s21 + $0x20] sm:$0xff]  ;;  %v215_v10 = vld [vmem:[%s482_s21 + $0x28] sm:$0xff] }
  0x11   : > { %v236_v11 = vmul.f32 %v384_v0, %v213_v8  ;;  %v237_v12 = vmul.f32 %v384_v0, %v214_v9  ;;  %v238_v13 = vmul.f32 %v384_v0, %v215_v10  ;;  %v216_v14 = vld [vmem:[%s482_s21 + $0x30] sm:$0xff]  ;;  %v217_v15 = vld [vmem:[%s482_s21 + $0x38] sm:$0xff]  ;;  %v218_v16 = vld [vmem:[%s482_s21 + $0x40] sm:$0xff] }
  0x12   : > { %v256_v17 = vadd.f32 %v487_v1, %v233_v5  ;;  %v257_v18 = vadd.f32 %v487_v1, %v234_v6  ;;  %v258_v19 = vadd.f32 %v487_v1, %v235_v7  ;;  %v239_v20 = vmul.f32 %v384_v0, %v216_v14  ;;  %v219_v21 = vld [vmem:[%s482_s21 + $0x48] sm:$0xff]  ;;  %v220_v22 = vld [vmem:[%s482_s21 + $0x50] sm:$0xff]  ;;  %v221_v23 = vld [vmem:[%s482_s21 + $0x58] sm:$0xff] }
  0x13   : > { %v259_v24 = vadd.f32 %v487_v1, %v236_v11  ;;  %v260_v25 = vadd.f32 %v487_v1, %v237_v12  ;;  %v261_v26 = vadd.f32 %v487_v1, %v238_v13  ;;  %v240_v27 = vmul.f32 %v384_v0, %v217_v15  ;;  %v222_v28 = vld [vmem:[%s482_s21 + $0x60] sm:$0xff]  ;;  %v223_v29 = vld [vmem:[%s482_s21 + $0x68] sm:$0xff]  ;;  %v224_v30 = vld [vmem:[%s482_s21 + $0x70] sm:$0xff] }
  0x14   : > { %272 = vst [vmem:[%s498_s26] sm:$0xff] %v256_v17  ;;  %273 = vst [vmem:[%s498_s26 + $0x8] sm:$0xff] %v257_v18  ;;  %v262_v31 = vadd.f32 %v487_v1, %v239_v20  ;;  %v241_v32 = vmul.f32 %v384_v0, %v218_v16  ;;  %v242_v33 = vmul.f32 %v384_v0, %v219_v21  ;;  %v225_v35 = vld [vmem:[%s482_s21 + $0x78] sm:$0xff] }
  0x15   : > { %274 = vst [vmem:[%s498_s26 + $0x10] sm:$0xff] %v258_v19  ;;  %v243_v34 = vmul.f32 %v384_v0, %v220_v22  ;;  %275 = vst [vmem:[%s498_s26 + $0x18] sm:$0xff] %v259_v24  ;;  %v263_v36 = vadd.f32 %v487_v1, %v240_v27  ;;  %v244_v37 = vmul.f32 %v384_v0, %v221_v23 }
  0x16   : > { %276 = vst [vmem:[%s498_s26 + $0x20] sm:$0xff] %v260_v25  ;;  %277 = vst [vmem:[%s498_s26 + $0x28] sm:$0xff] %v261_v26  ;;  %v245_v38 = vmul.f32 %v384_v0, %v222_v28  ;;  %v246_v39 = vmul.f32 %v384_v0, %v223_v29  ;;  %v264_v40 = vadd.f32 %v487_v1, %v241_v32 }
  0x17   : > { %278 = vst [vmem:[%s498_s26 + $0x30] sm:$0xff] %v262_v31  ;;  %v265_v41 = vadd.f32 %v487_v1, %v242_v33  ;;  %v266_v42 = vadd.f32 %v487_v1, %v243_v34  ;;  %v247_v43 = vmul.f32 %v384_v0, %v224_v30  ;;  %279 = vst [vmem:[%s498_s26 + $0x38] sm:$0xff] %v263_v36 }
  0x18   : > { %v267_v44 = vadd.f32 %v487_v1, %v244_v37  ;;  %v268_v45 = vadd.f32 %v487_v1, %v245_v38  ;;  %v269_v46 = vadd.f32 %v487_v1, %v246_v39  ;;  %v248_v47 = vmul.f32 %v384_v0, %v225_v35  ;;  %280 = vst [vmem:[%s498_s26 + $0x40] sm:$0xff] %v264_v40 }
  0x19   : > { %281 = vst [vmem:[%s498_s26 + $0x48] sm:$0xff] %v265_v41  ;;  %282 = vst [vmem:[%s498_s26 + $0x50] sm:$0xff] %v266_v42  ;;  %v270_v48 = vadd.f32 %v487_v1, %v247_v43 }
  0x1a   : > { %283 = vst [vmem:[%s498_s26 + $0x58] sm:$0xff] %v267_v44  ;;  %284 = vst [vmem:[%s498_s26 + $0x60] sm:$0xff] %v268_v45  ;;  %v271_v49 = vadd.f32 %v487_v1, %v248_v47 }
  0x1b   : > { %285 = vst [vmem:[%s498_s26 + $0x68] sm:$0xff] %v269_v46  ;;  %286 = vst [vmem:[%s498_s26 + $0x70] sm:$0xff] %v270_v48 }
  0x1c   : > { %287 = vst [vmem:[%s498_s26 + $0x78] sm:$0xff] %v271_v49 }
  0x1d PF: > { %s13_s14 = sadd.s32 1, %s436_s14   ;;  %s555_s12 = smov %s432_s13 }
  0x1e   : > { %p10_p5 = scmp.ge.s32.totalorder %s13_s14, 6   ;;  %s556_s13 = smov %s558_s15 }
  0x20   :  { %12 = sbr.rel (!%p10_p5) target bundleno = 2 (0x2), region = 62 }

// kernel: unet_innermost_forward.4
= control target key start
LH: loop header
LB: loop body
LE: loop exit
PB: predicated region body
PF: predicated region fallthrough
CT: control target
= control target key end

     0   :  { %s935_s12 = smov 0   ;;  %s937_s13 = smov 0   ;;  %s1017_s0 = inlined_call_operand.vmem [shape: bf16[4,128,128], index: 0, kind: input, shape index: {}]   ;;  %s1018_s1 = inlined_call_operand.vmem [shape: bf16[4,128,128], index: 1, kind: input, shape index: {}]   ;;  %s1019_s2 = inlined_call_operand.vmem [shape: f32[4,128,128], index: 2, kind: output, shape index: {0}]   ;;  %s1020_s3 = inlined_call_operand.vmem [shape: f32[4,1,2,128], index: 3, kind: output, shape index: {1}]  }
   0x1   :  { %s939_s14 = smov 0  }
   0x2 LB: > { %s33_s15 = sadd.s32 1, %s909_s13  ;;  %p758_p0 = scmp.ge.s32.totalorder %s913_s14, 1  ;;  %s913_s14 = sphi %s939_s14, %s14_s14   ;;  %s909_s13 = sphi %s937_s13, %s1022_s13   ;;  %s905_s12 = sphi %s935_s12, %s1021_s12  }
   0x3   : > { %p35_p1 = scmp.ge.s32.totalorder %s33_s15, 4  ;;  %p189_p2 = scmp.lt.s32.totalorder %s913_s14, 5 }
   0x5   : > { %s1024_s15 = smov (%p35_p1, %s33_s15), 0  ;;  %p190_p3 = pnand %p758_p0, %p189_p2 }
   0x6   : > { %p243_p4 = scmp.lt.s32.totalorder (!%p190_p3), %s905_s12, 3 }
   0x7   : > { %193 = sbr.rel (%p190_p3) target bundleno = 292 (0x124), region = 28 }
   0xc   : > { %s1026_s12 = smov (!%p243_p4, %s905_s12), 3 }
   0xd   : > { %s784_s16 = sshll.u32 %s1026_s12, 6  ;;  %s786_s23 = sshll.u32 %s1026_s12, 7 }
   0xe   : > { %s959_s19 = scalar_lea.vmem %s1018_s1, %s784_s16  ;;  %s967_s22 = scalar_lea.vmem %s1017_s0, %s784_s16 }
   0xf   : > { %v875_v0 = vld [vmem:[%s959_s19 + $0x38] sm:$0xff]   ;;  %v876_v1 = vld [vmem:[%s959_s19 + $0x30] sm:$0xff]   ;;  %v877_v2 = vld [vmem:[%s959_s19 + $0x28] sm:$0xff]   ;;  %s986_s26 = scalar_lea.vmem %s1019_s2, %s786_s23  ;;  %s765_s27 = sshll.u32 %s1026_s12, 1 }
  0x10   : > { %803 = vmatprep.subr.bf16.mxu0 %v875_v0  ;;  %835 = vmatprep.subr.bf16.mxu1 %v875_v0  ;;  %v878_v3 = vld [vmem:[%s959_s19 + $0x20] sm:$0xff]   ;;  %v879_v5 = vld [vmem:[%s959_s19 + $0x18] sm:$0xff]   ;;  %v880_v7 = vld [vmem:[%s959_s19 + $0x10] sm:$0xff]   ;;  %s282_s30 = scalar_lea.vmem %s1020_s3, %s765_s27 }
  0x11   : > { %804 = vmatpush3.bf16.msra.mxu0 %v875_v0  ;;  %843 = vmatpush3.bf16.msra.mxu1 %v875_v0  ;;  %v883_v4 = vld [vmem:[%s967_s22] sm:$0xff]   ;;  %v881_v8 = vld [vmem:[%s959_s19 + $0x8] sm:$0xff]   ;;  %v885_v12 = vld [vmem:[%s967_s22 + $0x10] sm:$0xff]  }
  0x12   : > { %805 = vmatprep.subr.bf16.mxu0 %v876_v1  ;;  %836 = vmatprep.subr.bf16.mxu1 %v876_v1  ;;  %v887_v6 = vld [vmem:[%s967_s22 + $0x20] sm:$0xff]   ;;  %v884_v10 = vld [vmem:[%s967_s22 + $0x8] sm:$0xff]   ;;  %v889_v13 = vld [vmem:[%s967_s22 + $0x30] sm:$0xff]  }
  0x13   : > { %819 = vmatprep.mubr.bf16.mxu0 %v883_v4  ;;  %827 = vmatprep.mubr.bf16.mxu1 %v887_v6  ;;  %v882_v9 = vld [vmem:[%s959_s19] sm:$0xff]   ;;  %v888_v11 = vld [vmem:[%s967_s22 + $0x28] sm:$0xff]   ;;  %v886_v14 = vld [vmem:[%s967_s22 + $0x18] sm:$0xff]  }
  0x14   : > { %v890_v15 = vld [vmem:[%s967_s22 + $0x38] sm:$0xff]  }
  0x15   : > { %806 = vmatpush3.bf16.msra.mxu0 %v876_v1  ;;  %844 = vmatpush3.bf16.msra.mxu1 %v876_v1 }
  0x16   : > { %807 = vmatprep.subr.bf16.mxu0 %v877_v2  ;;  %837 = vmatprep.subr.bf16.mxu1 %v877_v2 }
  0x19   : > { %808 = vmatpush3.bf16.msra.mxu0 %v877_v2  ;;  %845 = vmatpush3.bf16.msra.mxu1 %v877_v2 }
  0x1a   : > { %809 = vmatprep.subr.bf16.mxu0 %v878_v3  ;;  %838 = vmatprep.subr.bf16.mxu1 %v878_v3 }
  0x1d   : > { %810 = vmatpush3.bf16.msra.mxu0 %v878_v3  ;;  %846 = vmatpush3.bf16.msra.mxu1 %v878_v3 }
  0x1e   : > { %811 = vmatprep.subr.bf16.mxu0 %v879_v5  ;;  %839 = vmatprep.subr.bf16.mxu1 %v879_v5 }
  0x21   : > { %812 = vmatpush3.bf16.msra.mxu0 %v879_v5  ;;  %847 = vmatpush3.bf16.msra.mxu1 %v879_v5 }
  0x22   : > { %813 = vmatprep.subr.bf16.mxu0 %v880_v7  ;;  %840 = vmatprep.subr.bf16.mxu1 %v880_v7 }
  0x25   : > { %814 = vmatpush3.bf16.msra.mxu0 %v880_v7  ;;  %848 = vmatpush3.bf16.msra.mxu1 %v880_v7 }
  0x26   : > { %815 = vmatprep.subr.bf16.mxu0 %v881_v8  ;;  %841 = vmatprep.subr.bf16.mxu1 %v881_v8 }
  0x29   : > { %816 = vmatpush3.bf16.msra.mxu0 %v881_v8  ;;  %849 = vmatpush3.bf16.msra.mxu1 %v881_v8 }
  0x2a   : > { %817 = vmatprep.subr.bf16.mxu0 %v882_v9  ;;  %842 = vmatprep.subr.bf16.mxu1 %v882_v9 }
  0x2d   : > { %818 = vmatpush3.bf16.msra.mxu0 %v882_v9  ;;  %850 = vmatpush3.bf16.msra.mxu1 %v882_v9 }
  0x30   : > { %820 = vmatmul.mubr.bf16.vlgmr.msra.gmra.mxu0 %v884_v10  ;;  %828 = vmatmul.mubr.bf16.vlgmr.msra.gmra.mxu1 %v888_v11 }
  0x31   : > { %823 = vmatprep.mubr.bf16.mxu0 %v885_v12  ;;  %831 = vmatprep.mubr.bf16.mxu1 %v889_v13 }
  0x38   : > { %824 = vmatmul.mubr.bf16.gmra.mxu0 %v886_v14  ;;  %832 = vmatmul.mubr.bf16.gmra.mxu1 %v890_v15 }
  0xf0   : > { %v821_v16 = vpop.f32.mrf.mxu0  ;;  %v829_v17 = vpop.f32.mrf.mxu1 }
  0xf1   : > { %511 = vst [vmem:[%s986_s26 + $0x10] sm:$0xff] %v821_v16  ;;  %519 = vst [vmem:[%s986_s26 + $0x50] sm:$0xff] %v829_v17  ;;  %v549_v29 = vmul.f32 %v821_v16, %v821_v16  ;;  %v557_v59 = vmul.f32 %v829_v17, %v829_v17 }
  0xf2   : > { %v446_v18 = vpop.f32.mrf.mxu0  ;;  %v478_v19 = vpop.f32.mrf.mxu1 }
  0xf3   : > { %509 = vst [vmem:[%s986_s26] sm:$0xff] %v446_v18  ;;  %517 = vst [vmem:[%s986_s26 + $0x40] sm:$0xff] %v478_v19  ;;  %v547_v24 = vmul.f32 %v446_v18, %v446_v18  ;;  %v555_v53 = vmul.f32 %v478_v19, %v478_v19 }
  0xf4   : > { %v822_v20 = vpop.f32.mrf.mxu0  ;;  %v830_v21 = vpop.f32.mrf.mxu1 }
  0xf5   : > { %512 = vst [vmem:[%s986_s26 + $0x18] sm:$0xff] %v822_v20  ;;  %520 = vst [vmem:[%s986_s26 + $0x58] sm:$0xff] %v830_v21  ;;  %v550_v34 = vmul.f32 %v822_v20, %v822_v20  ;;  %v558_v62 = vmul.f32 %v830_v21, %v830_v21 }
  0xf6   : > { %v449_v22 = vpop.f32.mrf.mxu0  ;;  %v481_v23 = vpop.f32.mrf.mxu1 }
  0xf7   : > { %510 = vst [vmem:[%s986_s26 + $0x8] sm:$0xff] %v449_v22  ;;  %v525_v25 = vadd.f32 %v449_v22, %v446_v18  ;;  %v548_v26 = vmul.f32 %v449_v22, %v449_v22  ;;  %518 = vst [vmem:[%s986_s26 + $0x48] sm:$0xff] %v481_v23  ;;  %v556_v57 = vmul.f32 %v481_v23, %v481_v23 }
  0xf8   : > { %v825_v27 = vpop.f32.mrf.mxu0  ;;  %v833_v28 = vpop.f32.mrf.mxu1 }
  0xf9   : > { %v526_v30 = vadd.f32 %v821_v16, %v525_v25  ;;  %v563_v31 = vadd.f32 %v548_v26, %v547_v24  ;;  %515 = vst [vmem:[%s986_s26 + $0x30] sm:$0xff] %v825_v27  ;;  %523 = vst [vmem:[%s986_s26 + $0x70] sm:$0xff] %v833_v28  ;;  %v553_v47 = vmul.f32 %v825_v27, %v825_v27 }
  0xfa   : > { %v462_v32 = vpop.f32.mrf.mxu0  ;;  %v494_v33 = vpop.f32.mrf.mxu1  ;;  %v561_v7 = vmul.f32 %v833_v28, %v833_v28 }
  0xfb   : > { %v564_v35 = vadd.f32 %v563_v31, %v549_v29  ;;  %513 = vst [vmem:[%s986_s26 + $0x20] sm:$0xff] %v462_v32  ;;  %v527_v36 = vadd.f32 %v822_v20, %v526_v30  ;;  %521 = vst [vmem:[%s986_s26 + $0x60] sm:$0xff] %v494_v33  ;;  %v551_v40 = vmul.f32 %v462_v32, %v462_v32 }
  0xfc   : > { %v826_v37 = vpop.f32.mrf.mxu0  ;;  %v834_v38 = vpop.f32.mrf.mxu1  ;;  %v559_v2 = vmul.f32 %v494_v33, %v494_v33 }
  0xfd   : > { %v528_v39 = vadd.f32 %v527_v36, %v462_v32  ;;  %v565_v41 = vadd.f32 %v564_v35, %v550_v34  ;;  %516 = vst [vmem:[%s986_s26 + $0x38] sm:$0xff] %v826_v37  ;;  %524 = vst [vmem:[%s986_s26 + $0x78] sm:$0xff] %v834_v38  ;;  %v554_v50 = vmul.f32 %v826_v37, %v826_v37 }
  0xfe   : > { %v465_v42 = vpop.f32.mrf.mxu0  ;;  %v497_v43 = vpop.f32.mrf.mxu1  ;;  %v562_v10 = vmul.f32 %v834_v38, %v834_v38 }
  0xff   : > { %v566_v44 = vadd.f32 %v565_v41, %v551_v40  ;;  %514 = vst [vmem:[%s986_s26 + $0x28] sm:$0xff] %v465_v42  ;;  %v529_v45 = vadd.f32 %v528_v39, %v465_v42  ;;  %v552_v46 = vmul.f32 %v465_v42, %v465_v42  ;;  %522 = vst [vmem:[%s986_s26 + $0x68] sm:$0xff] %v497_v43 }
 0x100   : > { %v560_v6 = vmul.f32 %v497_v43, %v497_v43 }
 0x101   : > { %v530_v48 = vadd.f32 %v825_v27, %v529_v45  ;;  %v567_v49 = vadd.f32 %v566_v44, %v552_v46 }
 0x103   : > { %v531_v51 = vadd.f32 %v826_v37, %v530_v48  ;;  %v568_v52 = vadd.f32 %v567_v49, %v553_v47 }
 0x105   : > { %v569_v54 = vadd.f32 %v568_v52, %v554_v50  ;;  %v532_v55 = vadd.f32 %v531_v51, %v478_v19 }
 0x107   : > { %v533_v56 = vadd.f32 %v532_v55, %v481_v23  ;;  %v570_v58 = vadd.f32 %v569_v54, %v555_v53 }
 0x109   : > { %v534_v60 = vadd.f32 %v829_v17, %v533_v56  ;;  %v571_v61 = vadd.f32 %v570_v58, %v556_v57 }
 0x10b   : > { %v572_v63 = vadd.f32 %v571_v61, %v557_v59  ;;  %v535_v0 = vadd.f32 %v830_v21, %v534_v60 }
 0x10d   : > { %v536_v1 = vadd.f32 %v535_v0, %v494_v33  ;;  %v573_v3 = vadd.f32 %v572_v63, %v558_v62 }
 0x10f   : > { %v574_v4 = vadd.f32 %v573_v3, %v559_v2  ;;  %v537_v5 = vadd.f32 %v536_v1, %v497_v43 }
 0x111   : > { %v538_v8 = vadd.f32 %v833_v28, %v537_v5  ;;  %v575_v9 = vadd.f32 %v574_v4, %v560_v6 }
 0x113   : > { %v539_v11 = vadd.f32 %v834_v38, %v538_v8  ;;  %v576_v12 = vadd.f32 %v575_v9, %v561_v7 }
 0x115   : > { %v540_v13 = vrot.slane %v539_v11, 4  ;;  %v577_v14 = vadd.f32 %v576_v12, %v562_v10 }
 0x117   : > { %v541_v15 = vadd.f32 %v540_v13, %v539_v11  ;;  %v578_v16 = vrot.slane %v577_v14, 4 }
 0x119   : > { %v542_v17 = vrot.slane %v541_v15, 2  ;;  %v579_v18 = vadd.f32 %v578_v16, %v577_v14 }
 0x11b   : > { %v543_v19 = vadd.f32 %v542_v17, %v541_v15  ;;  %v580_v20 = vrot.slane %v579_v18, 2 }
 0x11d   : > { %v544_v21 = vrot.slane %v543_v19, 1  ;;  %v581_v22 = vadd.f32 %v580_v20, %v579_v18 }
 0x11f   : > { %v545_v23 = vadd.f32 %v544_v21, %v543_v19  ;;  %v582_v24 = vrot.slane %v581_v22, 1 }
 0x121   : > { %546 = vst [vmem:[%s282_s30] sm:$0x1] %v545_v23  ;;  %v583_v25 = vadd.f32 %v582_v24, %v581_v22 }
 0x123   : > { %584 = vst [vmem:[%s282_s30 + $0x1] sm:$0x1] %v583_v25 }
 0x124 PF: > { %s14_s14 = sadd.s32 1, %s913_s14   ;;  %s1021_s12 = smov %s909_s13 }
 0x125   : > { %p11_p5 = scmp.ge.s32.totalorder %s14_s14, 6   ;;  %s1022_s13 = smov %s1024_s15 }
 0x127   :  { %13 = sbr.rel (!%p11_p5) target bundleno = 2 (0x2), region = 73 }

</bundles_post_ra>
